<compile_context>
chip_gen: v7x
topology: tpu7x:2x2x1
jax: 0.10.0
libtpu: 0.0.40
codegen_flags: <defaults>
</compile_context>

<pallas_src>
import functools

import jax
import jax.numpy as jnp
from jax.experimental import pallas as pl
from jax.experimental.pallas import tpu as pltpu

VMEM = pltpu.MemorySpace.VMEM


# ----------------------------- fused kernel -----------------------------
def _fused_mcn_kernel(text_ref, video_ref, audio_ref,
                      pool_w_ref, pool_b_ref,
                      w1_ref, b1_ref, w2_ref, b2_ref,
                      wr1_ref, br1_ref, wr2_ref, br2_ref, colw_ref,
                      out_ref, loss_ref,
                      gt_scr):
    B, S_t, D_t = text_ref.shape
    E = pool_w_ref.shape[1]
    D_v = video_ref.shape[2]
    D_a = audio_ref.shape[2]

    # ---- Sentence_Maxpool: relu(text @ W + b), max over tokens ----
    xt = text_ref[...].astype(jnp.float32)
    if S_t % 8 == 0:
        # single 2-D MXU matmul with M = B*S_t
        h = jnp.dot(xt.reshape(B * S_t, D_t), pool_w_ref[...],
                    preferred_element_type=jnp.float32)
        h = jnp.maximum(h + pool_b_ref[...], 0.0)
        text_gt = jnp.max(h.reshape(B, S_t, E), axis=1)          # (B, E)
    else:
        h = jnp.einsum("bsd,de->bse", xt, pool_w_ref[...],
                       preferred_element_type=jnp.float32)
        text_gt = jnp.max(jnp.maximum(h + pool_b_ref[...], 0.0), axis=1)

    # ---- temporal mean pooling (feature_extractor_method == 'mean') ----
    video_gt = jnp.mean(video_ref[...].astype(jnp.float32), axis=1)  # (B, D_v)
    audio_gt = jnp.mean(audio_ref[...].astype(jnp.float32), axis=1)  # (B, D_a)

    # ---- assemble lane-concatenated ground truth in VMEM scratch ----
    # layout: [ text_gt (E) | video_gt (D_v) | audio_gt (D_a) ]
    gt_scr[:, 0:E] = text_gt
    gt_scr[:, E:E + D_v] = video_gt
    gt_scr[:, E + D_v:E + D_v + D_a] = audio_gt
    gt_cat = gt_scr[...]                                          # (B, E+D_v+D_a)

    # ---- 3 Gated_Embedding_Units as two block-diagonal matmuls ----
    # y = x @ W1 + b1 ; out = y * sigmoid(y @ W2 + b2)   (== F.glu(cat([y,g],1),1))
    y = jnp.dot(gt_cat, w1_ref[...], preferred_element_type=jnp.float32) + b1_ref[...]
    g = jnp.dot(y, w2_ref[...], preferred_element_type=jnp.float32) + b2_ref[...]
    out_cat = y * jax.nn.sigmoid(g)                               # (B, 3E): [text|video|audio]
    out_ref[...] = out_cat.astype(out_ref.dtype)

    # ---- 3 recon MLPs (block-diagonal) + combined MSE loss, fully in-kernel ----
    hr = jnp.dot(out_cat, wr1_ref[...], preferred_element_type=jnp.float32) + br1_ref[...]
    hr = jnp.maximum(hr, 0.0)
    r = jnp.dot(hr, wr2_ref[...], preferred_element_type=jnp.float32) + br2_ref[...]
    r = jnp.maximum(r, 0.0)                                       # (B, E+D_v+D_a)

    d = r - gt_cat
    # colw holds 1/E, 1/D_v, 1/D_a per column so that
    # sum_j d^2 * colw == mse_t + mse_v + mse_a (per row)
    per_row = jnp.sum(d * d * colw_ref[...], axis=1, keepdims=True)   # (B, 1)
    loss2d = jnp.sum(per_row, axis=0, keepdims=True) * (1.0 / B)      # (1, 1)
    loss_ref[...] = jnp.broadcast_to(loss2d, loss_ref.shape)          # lane-dense (1, 128)


# ----------------------------- forward wrapper -----------------------------
@functools.partial(jax.jit, static_argnames=("mode", "recon"))
def mcn_forward(packed, text, video, audio, mode="train", recon=True):
    B = text.shape[0]
    E = packed["pool_w"].shape[1]
    D_v = video.shape[2]
    D_a = audio.shape[2]
    d_cat = E + D_v + D_a

    out_cat, loss_vec = pl.pallas_call(
        _fused_mcn_kernel,
        out_shape=(jax.ShapeDtypeStruct((B, 3 * E), jnp.float32),
                   jax.ShapeDtypeStruct((1, 128), jnp.float32)),
        in_specs=[pl.BlockSpec(memory_space=VMEM)] * 14,
        out_specs=(pl.BlockSpec(memory_space=VMEM),
                   pl.BlockSpec(memory_space=VMEM)),
        scratch_shapes=[pltpu.VMEM((B, d_cat), jnp.float32)],
    )(text, video, audio,
      packed["pool_w"], packed["pool_b"],
      packed["w1"], packed["b1"], packed["w2"], packed["b2"],
      packed["wr1"], packed["br1"], packed["wr2"], packed["br2"],
      packed["colw"])

    text_out = out_cat[:, 0:E]
    video_out = out_cat[:, E:2 * E]
    audio_out = out_cat[:, 2 * E:3 * E]
    if mode == "train" and recon:
        return text_out, video_out, audio_out, loss_vec[0, 0]
    return text_out, video_out, audio_out


# ---------------- parameter init (deterministic, synthetic) ----------------
def init_linear(key, din, dout):
    kw, kb = jax.random.split(key)
    w = jax.random.normal(kw, (din, dout), jnp.float32) * 0.02
    b = jax.random.normal(kb, (1, dout), jnp.float32) * 0.02
    return w, b


def init_mcn_params(key, text_feat, video_feat, audio_feat, embd_dim, recon_size):
    ks = jax.random.split(key, 13)
    p = {}
    # Sentence_Maxpool (text_pooling_caption)
    p["pool_w"], p["pool_b"] = init_linear(ks[0], text_feat, embd_dim)
    # GU_text_captions
    p["gut_w1"], p["gut_b1"] = init_linear(ks[1], embd_dim, embd_dim)
    p["gut_w2"], p["gut_b2"] = init_linear(ks[2], embd_dim, embd_dim)
    # GU_video
    p["guv_w1"], p["guv_b1"] = init_linear(ks[3], video_feat, embd_dim)
    p["guv_w2"], p["guv_b2"] = init_linear(ks[4], embd_dim, embd_dim)
    # GU_audio
    p["gua_w1"], p["gua_b1"] = init_linear(ks[5], audio_feat, embd_dim)
    p["gua_w2"], p["gua_b2"] = init_linear(ks[6], embd_dim, embd_dim)
    # recon_v / recon_a / recon_t
    p["rv_w1"], p["rv_b1"] = init_linear(ks[7], embd_dim, recon_size)
    p["rv_w2"], p["rv_b2"] = init_linear(ks[8], recon_size, video_feat)
    p["ra_w1"], p["ra_b1"] = init_linear(ks[9], embd_dim, recon_size)
    p["ra_w2"], p["ra_b2"] = init_linear(ks[10], recon_size, audio_feat)
    p["rt_w1"], p["rt_b1"] = init_linear(ks[11], embd_dim, recon_size)
    p["rt_w2"], p["rt_b2"] = init_linear(ks[12], recon_size, embd_dim)
    return p


def _block_diag(mats):
    rows = sum(m.shape[0] for m in mats)
    cols = sum(m.shape[1] for m in mats)
    out = jnp.zeros((rows, cols), jnp.float32)
    r = c = 0
    for m in mats:
        out = out.at[r:r + m.shape[0], c:c + m.shape[1]].set(m)
        r += m.shape[0]
        c += m.shape[1]
    return out


def pack_mcn_params(p, video_feat, audio_feat, embd_dim):
    """Pack per-modality weights into block-diagonal matrices (order: text|video|audio)."""
    return {
        "pool_w": p["pool_w"], "pool_b": p["pool_b"],
        # GEU stage 1: gt_cat (E + D_v + D_a) -> y_cat (3E)
        "w1": _block_diag([p["gut_w1"], p["guv_w1"], p["gua_w1"]]),
        "b1": jnp.concatenate([p["gut_b1"], p["guv_b1"], p["gua_b1"]], axis=1),
        # GEU stage 2 (context gating): y_cat (3E) -> g_cat (3E)
        "w2": _block_diag([p["gut_w2"], p["guv_w2"], p["gua_w2"]]),
        "b2": jnp.concatenate([p["gut_b2"], p["guv_b2"], p["gua_b2"]], axis=1),
        # recon layer 1: out_cat (3E) -> hidden (3R)
        "wr1": _block_diag([p["rt_w1"], p["rv_w1"], p["ra_w1"]]),
        "br1": jnp.concatenate([p["rt_b1"], p["rv_b1"], p["ra_b1"]], axis=1),
        # recon layer 2: hidden (3R) -> recon (E + D_v + D_a)
        "wr2": _block_diag([p["rt_w2"], p["rv_w2"], p["ra_w2"]]),
        "br2": jnp.concatenate([p["rt_b2"], p["rv_b2"], p["ra_b2"]], axis=1),
        # per-column weights so sum(d^2 * colw) == mse_t + mse_v + mse_a
        "colw": jnp.concatenate([
            jnp.full((1, embd_dim), 1.0 / embd_dim, jnp.float32),
            jnp.full((1, video_feat), 1.0 / video_feat, jnp.float32),
            jnp.full((1, audio_feat), 1.0 / audio_feat, jnp.float32)], axis=1),
    }


if __name__ == "__main__":
    B = 2
    S_text, S_video, S_audio = 8, 6, 5
    text_feat, video_feat, audio_feat = 40, 32, 48
    embd_dim, recon_size = 64, 32

    key = jax.random.PRNGKey(0)
    k_text, k_video, k_audio, k_params = jax.random.split(key, 4)

    text = jax.random.normal(k_text, (B, S_text, text_feat), jnp.float32)
    video = jax.random.normal(k_video, (B, S_video, video_feat), jnp.float32)
    audio = jax.random.normal(k_audio, (B, S_audio, audio_feat), jnp.float32)

    params = init_mcn_params(k_params, text_feat, video_feat, audio_feat,
                             embd_dim, recon_size)
    packed = pack_mcn_params(params, video_feat, audio_feat, embd_dim)

    text_o, video_o, audio_o, loss = mcn_forward(packed, text, video, audio,
                                                 mode="train", recon=True)
    jax.block_until_ready((text_o, video_o, audio_o, loss))

    assert text_o.shape == (B, embd_dim)
    assert video_o.shape == (B, embd_dim)
    assert audio_o.shape == (B, embd_dim)
    assert loss.shape == ()
    print("KERNEL_OK")
</pallas_src>

<mosaic_0001>
module attributes {stable_mosaic.version = 11 : i64} {
  func.func @_fused_mcn_kernel(%arg0: memref<2x8x40xf32, #tpu.memory_space<vmem>>, %arg1: memref<2x6x32xf32, #tpu.memory_space<vmem>>, %arg2: memref<2x5x48xf32, #tpu.memory_space<vmem>>, %arg3: memref<40x64xf32, #tpu.memory_space<vmem>>, %arg4: memref<1x64xf32, #tpu.memory_space<vmem>>, %arg5: memref<144x192xf32, #tpu.memory_space<vmem>>, %arg6: memref<1x192xf32, #tpu.memory_space<vmem>>, %arg7: memref<192x192xf32, #tpu.memory_space<vmem>>, %arg8: memref<1x192xf32, #tpu.memory_space<vmem>>, %arg9: memref<192x96xf32, #tpu.memory_space<vmem>>, %arg10: memref<1x96xf32, #tpu.memory_space<vmem>>, %arg11: memref<96x144xf32, #tpu.memory_space<vmem>>, %arg12: memref<1x144xf32, #tpu.memory_space<vmem>>, %arg13: memref<1x144xf32, #tpu.memory_space<vmem>>, %arg14: memref<2x192xf32, #tpu.memory_space<vmem>>, %arg15: memref<1x128xf32, #tpu.memory_space<vmem>>, %arg16: memref<2x144xf32, #tpu.memory_space<vmem>>) attributes {dimension_semantics = [], scalar_prefetch = 0 : i64, scratch_operands = 1 : i64, tpu.core_type = #tpu.core_type<tc>} {
    %c0 = arith.constant 0 : index
    %c0_0 = arith.constant 0 : index
    %c0_1 = arith.constant 0 : index
    %0 = vector.load %arg0[%c0, %c0_0, %c0_1] : memref<2x8x40xf32, #tpu.memory_space<vmem>>, vector<2x8x40xf32>
    %1 = vector.shape_cast %0 : vector<2x8x40xf32> to vector<16x40xf32>
    %c0_2 = arith.constant 0 : index
    %c0_3 = arith.constant 0 : index
    %2 = vector.load %arg3[%c0_2, %c0_3] : memref<40x64xf32, #tpu.memory_space<vmem>>, vector<40x64xf32>
    %cst = arith.constant dense<0.000000e+00> : vector<16x64xf32>
    %3 = tpu.matmul %1, %2, %cst {dimension_numbers = #tpu.dot_dimension_numbers<[1], [0], [0], [1], [0, 0, 1, 1], [], []>} : vector<16x40xf32>, vector<40x64xf32>, vector<16x64xf32> -> vector<16x64xf32>
    %c0_4 = arith.constant 0 : index
    %c0_5 = arith.constant 0 : index
    %4 = vector.load %arg4[%c0_4, %c0_5] : memref<1x64xf32, #tpu.memory_space<vmem>>, vector<1x64xf32>
    %5 = vector.broadcast %4 : vector<1x64xf32> to vector<16x64xf32>
    %6 = arith.addf %3, %5 : vector<16x64xf32>
    %cst_6 = arith.constant 0.000000e+00 : f32
    %7 = vector.broadcast %cst_6 : f32 to vector<16x64xf32>
    %8 = arith.maximumf %6, %7 : vector<16x64xf32>
    %9 = vector.shape_cast %8 : vector<16x64xf32> to vector<2x8x64xf32>
    %cst_7 = arith.constant dense<0xFF800000> : vector<2x64xf32>
    %10 = vector.multi_reduction <maximumf>, %9, %cst_7 [1] : vector<2x8x64xf32> to vector<2x64xf32>
    %c0_8 = arith.constant 0 : index
    %c0_9 = arith.constant 0 : index
    %c0_10 = arith.constant 0 : index
    %11 = vector.load %arg1[%c0_8, %c0_9, %c0_10] : memref<2x6x32xf32, #tpu.memory_space<vmem>>, vector<2x6x32xf32>
    %cst_11 = arith.constant dense<0.000000e+00> : vector<2x32xf32>
    %12 = vector.multi_reduction <add>, %11, %cst_11 [1] : vector<2x6x32xf32> to vector<2x32xf32>
    %cst_12 = arith.constant 6.000000e+00 : f32
    %13 = vector.broadcast %cst_12 : f32 to vector<2x32xf32>
    %14 = arith.divf %12, %13 : vector<2x32xf32>
    %c0_13 = arith.constant 0 : index
    %c0_14 = arith.constant 0 : index
    %c0_15 = arith.constant 0 : index
    %15 = vector.load %arg2[%c0_13, %c0_14, %c0_15] : memref<2x5x48xf32, #tpu.memory_space<vmem>>, vector<2x5x48xf32>
    %cst_16 = arith.constant dense<0.000000e+00> : vector<2x48xf32>
    %16 = vector.multi_reduction <add>, %15, %cst_16 [1] : vector<2x5x48xf32> to vector<2x48xf32>
    %cst_17 = arith.constant 5.000000e+00 : f32
    %17 = vector.broadcast %cst_17 : f32 to vector<2x48xf32>
    %18 = arith.divf %16, %17 : vector<2x48xf32>
    %c0_18 = arith.constant 0 : index
    %c0_19 = arith.constant 0 : index
    %19 = vector.load %arg16[%c0_18, %c0_19] : memref<2x144xf32, #tpu.memory_space<vmem>>, vector<2x64xf32>
    tpu.vector_store %arg16[%c0_18, %c0_19], %10 {strides = array<i32>} : memref<2x144xf32, #tpu.memory_space<vmem>>, vector<2x64xf32>,
    %c0_20 = arith.constant 0 : index
    %c64 = arith.constant 64 : index
    %20 = vector.load %arg16[%c0_20, %c64] : memref<2x144xf32, #tpu.memory_space<vmem>>, vector<2x32xf32>
    tpu.vector_store %arg16[%c0_20, %c64], %14 {strides = array<i32>} : memref<2x144xf32, #tpu.memory_space<vmem>>, vector<2x32xf32>,
    %c0_21 = arith.constant 0 : index
    %c96 = arith.constant 96 : index
    %21 = vector.load %arg16[%c0_21, %c96] : memref<2x144xf32, #tpu.memory_space<vmem>>, vector<2x48xf32>
    tpu.vector_store %arg16[%c0_21, %c96], %18 {strides = array<i32>} : memref<2x144xf32, #tpu.memory_space<vmem>>, vector<2x48xf32>,
    %c0_22 = arith.constant 0 : index
    %c0_23 = arith.constant 0 : index
    %22 = vector.load %arg16[%c0_22, %c0_23] : memref<2x144xf32, #tpu.memory_space<vmem>>, vector<2x144xf32>
    %c0_24 = arith.constant 0 : index
    %c0_25 = arith.constant 0 : index
    %23 = vector.load %arg5[%c0_24, %c0_25] : memref<144x192xf32, #tpu.memory_space<vmem>>, vector<144x192xf32>
    %cst_26 = arith.constant dense<0.000000e+00> : vector<2x192xf32>
    %24 = tpu.matmul %22, %23, %cst_26 {dimension_numbers = #tpu.dot_dimension_numbers<[1], [0], [0], [1], [0, 0, 1, 1], [], []>} : vector<2x144xf32>, vector<144x192xf32>, vector<2x192xf32> -> vector<2x192xf32>
    %c0_27 = arith.constant 0 : index
    %c0_28 = arith.constant 0 : index
    %25 = vector.load %arg6[%c0_27, %c0_28] : memref<1x192xf32, #tpu.memory_space<vmem>>, vector<1x192xf32>
    %26 = vector.broadcast %25 : vector<1x192xf32> to vector<2x192xf32>
    %27 = arith.addf %24, %26 : vector<2x192xf32>
    %c0_29 = arith.constant 0 : index
    %c0_30 = arith.constant 0 : index
    %28 = vector.load %arg7[%c0_29, %c0_30] : memref<192x192xf32, #tpu.memory_space<vmem>>, vector<192x192xf32>
    %cst_31 = arith.constant dense<0.000000e+00> : vector<2x192xf32>
    %29 = tpu.matmul %27, %28, %cst_31 {dimension_numbers = #tpu.dot_dimension_numbers<[1], [0], [0], [1], [0, 0, 1, 1], [], []>} : vector<2x192xf32>, vector<192x192xf32>, vector<2x192xf32> -> vector<2x192xf32>
    %c0_32 = arith.constant 0 : index
    %c0_33 = arith.constant 0 : index
    %30 = vector.load %arg8[%c0_32, %c0_33] : memref<1x192xf32, #tpu.memory_space<vmem>>, vector<1x192xf32>
    %31 = vector.broadcast %30 : vector<1x192xf32> to vector<2x192xf32>
    %32 = arith.addf %29, %31 : vector<2x192xf32>
    %33 = arith.negf %32 : vector<2x192xf32>
    %34 = math.exp %33 : vector<2x192xf32>
    %cst_34 = arith.constant 1.000000e+00 : f32
    %35 = vector.broadcast %cst_34 : f32 to vector<2x192xf32>
    %36 = arith.addf %35, %34 : vector<2x192xf32>
    %37 = arith.divf %35, %36 : vector<2x192xf32>
    %38 = arith.mulf %27, %37 : vector<2x192xf32>
    %c0_35 = arith.constant 0 : index
    %c0_36 = arith.constant 0 : index
    %39 = vector.load %arg14[%c0_35, %c0_36] : memref<2x192xf32, #tpu.memory_space<vmem>>, vector<2x192xf32>
    tpu.vector_store %arg14[%c0_35, %c0_36], %38 {strides = array<i32>} : memref<2x192xf32, #tpu.memory_space<vmem>>, vector<2x192xf32>,
    %c0_37 = arith.constant 0 : index
    %c0_38 = arith.constant 0 : index
    %40 = vector.load %arg9[%c0_37, %c0_38] : memref<192x96xf32, #tpu.memory_space<vmem>>, vector<192x96xf32>
    %cst_39 = arith.constant dense<0.000000e+00> : vector<2x96xf32>
    %41 = tpu.matmul %38, %40, %cst_39 {dimension_numbers = #tpu.dot_dimension_numbers<[1], [0], [0], [1], [0, 0, 1, 1], [], []>} : vector<2x192xf32>, vector<192x96xf32>, vector<2x96xf32> -> vector<2x96xf32>
    %c0_40 = arith.constant 0 : index
    %c0_41 = arith.constant 0 : index
    %42 = vector.load %arg10[%c0_40, %c0_41] : memref<1x96xf32, #tpu.memory_space<vmem>>, vector<1x96xf32>
    %43 = vector.broadcast %42 : vector<1x96xf32> to vector<2x96xf32>
    %44 = arith.addf %41, %43 : vector<2x96xf32>
    %cst_42 = arith.constant 0.000000e+00 : f32
    %45 = vector.broadcast %cst_42 : f32 to vector<2x96xf32>
    %46 = arith.maximumf %44, %45 : vector<2x96xf32>
    %c0_43 = arith.constant 0 : index
    %c0_44 = arith.constant 0 : index
    %47 = vector.load %arg11[%c0_43, %c0_44] : memref<96x144xf32, #tpu.memory_space<vmem>>, vector<96x144xf32>
    %cst_45 = arith.constant dense<0.000000e+00> : vector<2x144xf32>
    %48 = tpu.matmul %46, %47, %cst_45 {dimension_numbers = #tpu.dot_dimension_numbers<[1], [0], [0], [1], [0, 0, 1, 1], [], []>} : vector<2x96xf32>, vector<96x144xf32>, vector<2x144xf32> -> vector<2x144xf32>
    %c0_46 = arith.constant 0 : index
    %c0_47 = arith.constant 0 : index
    %49 = vector.load %arg12[%c0_46, %c0_47] : memref<1x144xf32, #tpu.memory_space<vmem>>, vector<1x144xf32>
    %50 = vector.broadcast %49 : vector<1x144xf32> to vector<2x144xf32>
    %51 = arith.addf %48, %50 : vector<2x144xf32>
    %cst_48 = arith.constant 0.000000e+00 : f32
    %52 = vector.broadcast %cst_48 : f32 to vector<2x144xf32>
    %53 = arith.maximumf %51, %52 : vector<2x144xf32>
    %54 = arith.subf %53, %22 : vector<2x144xf32>
    %55 = arith.mulf %54, %54 : vector<2x144xf32>
    %c0_49 = arith.constant 0 : index
    %c0_50 = arith.constant 0 : index
    %56 = vector.load %arg13[%c0_49, %c0_50] : memref<1x144xf32, #tpu.memory_space<vmem>>, vector<1x144xf32>
    %57 = vector.broadcast %56 : vector<1x144xf32> to vector<2x144xf32>
    %58 = arith.mulf %55, %57 : vector<2x144xf32>
    %cst_51 = arith.constant dense<0.000000e+00> : vector<2xf32>
    %59 = vector.multi_reduction <add>, %58, %cst_51 [1] : vector<2x144xf32> to vector<2xf32>
    %60 = vector.shape_cast %59 : vector<2xf32> to vector<2x1xf32>
    %cst_52 = arith.constant dense<0.000000e+00> : vector<1xf32>
    %61 = vector.multi_reduction <add>, %60, %cst_52 [0] : vector<2x1xf32> to vector<1xf32>
    %62 = vector.shape_cast %61 : vector<1xf32> to vector<1x1xf32>
    %cst_53 = arith.constant 5.000000e-01 : f32
    %63 = vector.broadcast %cst_53 : f32 to vector<1x1xf32>
    %64 = arith.mulf %62, %63 : vector<1x1xf32>
    %65 = vector.shape_cast %64 : vector<1x1xf32> to vector<1x1xf32>
    %66 = vector.broadcast %65 : vector<1x1xf32> to vector<1x128xf32>
    %c0_54 = arith.constant 0 : index
    %c0_55 = arith.constant 0 : index
    %67 = vector.load %arg15[%c0_54, %c0_55] : memref<1x128xf32, #tpu.memory_space<vmem>>, vector<1x128xf32>
    tpu.vector_store %arg15[%c0_54, %c0_55], %66 {strides = array<i32>} : memref<1x128xf32, #tpu.memory_space<vmem>>, vector<1x128xf32>,
    return
  }
}

</mosaic_0001>

<bundles_post_ra>
// kernel: mcn_forward.1
= control target key start
LH: loop header
LB: loop body
LE: loop exit
PB: predicated region body
PF: predicated region fallthrough
CT: control target
= control target key end

     0   :  { %21 = vsyncpa [#allocation4], 0  ;;  %s1921_s0 = inlined_call_operand.vmem [shape: f32[2,8,40], index: 0, kind: input, shape index: {}]   ;;  %s1922_s1 = inlined_call_operand.vmem [shape: f32[2,6,32], index: 1, kind: input, shape index: {}]   ;;  %s1923_s2 = inlined_call_operand.vmem [shape: f32[2,5,48], index: 2, kind: input, shape index: {}]   ;;  %s1924_s3 = inlined_call_operand.hbm [shape: f32[40,64], index: 3, kind: input, shape index: {}]   ;;  %s1925_s4 = inlined_call_operand.hbm [shape: f32[1,64], index: 4, kind: input, shape index: {}]   ;;  %s1926_s5 = inlined_call_operand.hbm [shape: f32[144,192], index: 5, kind: input, shape index: {}]   ;;  %s1927_s6 = inlined_call_operand.vmem [shape: f32[1,192], index: 6, kind: input, shape index: {}]   ;;  %s1928_s7 = inlined_call_operand.vmem [shape: f32[192,192], index: 7, kind: input, shape index: {}]   ;;  %s1929_s8 = inlined_call_operand.hbm [shape: f32[1,192], index: 8, kind: input, shape index: {}]   ;;  %s1930_s9 = inlined_call_operand.hbm [shape: f32[192,96], index: 9, kind: input, shape index: {}]   ;;  %s1931_s10 = inlined_call_operand.hbm [shape: f32[1,96], index: 10, kind: input, shape index: {}]   ;;  %s1932_s11 = inlined_call_operand.vmem [shape: f32[96,144], index: 11, kind: input, shape index: {}]   ;;  %s1933_s12 = inlined_call_operand.hbm [shape: f32[1,144], index: 12, kind: input, shape index: {}]   ;;  %s1934_s13 = inlined_call_operand.hbm [shape: f32[1,144], index: 13, kind: input, shape index: {}]   ;;  %s1935_s14 = inlined_call_operand.vmem [shape: f32[2,192], index: 14, kind: output, shape index: {0}]   ;;  %s1936_s15 = inlined_call_operand.hbm [shape: f32[1,128], index: 15, kind: output, shape index: {1}]  }
   0x1   :  { %22 = vsyncpa [#allocation7], 0 }
   0x2   :  { %23 = vsyncpa [#allocation10], 0 }
   0x3   :  { %24 = vsyncpa [#allocation13], 0 }
   0x4   :  { %25 = vsyncpa [#allocation16], 0 }
   0x5   :  { %26 = vsyncpa [#allocation5], 0  ;;  %s1383_s18 = smov [#allocation6]   ;;  %s1384_s20 = smov [#allocation9]  }
   0x6   :  { %s51_s19 = sshll.u32 %s1383_s18, 4  ;;  %s77_s21 = sshll.u32 %s1384_s20, 4  ;;  %s52_s19 = int_to_ptr.vmem [resolvable:$true] %s51_s19  ;;  %s78_s21 = int_to_ptr.vmem [resolvable:$true] %s77_s21 }
   0x7   :  { %s1173_s24 = scalar_lea.hbm %s1925_s4, 16 }
   0x8   :  { %p1174_p0 = scmp.ne.s32.totalorder %s1925_s4, %s1173_s24  ;;  %p1177_p1 = scmp.lt.u32.totalorder %s1173_s24, %s1925_s4 }
   0xa   :  { %p1179_p2 = pnand %p1177_p1, %p1174_p0 }
   0xc   :  { %1182 = shalt.err (!%p1179_p2)
}
   0xd   :  { %s1183_s29 = scalar_lea.vmem %s52_s19, 16  ;;  %s1187_s30 = scalar_lea.vmem %s52_s19, 32 }
   0xe   :  { %p1184_p3 = scmp.ne.s32.totalorder %s52_s19, %s1183_s29  ;;  %p1188_p4 = scmp.lt.s32.totalorder %s52_s19, %s52_s19 }
   0xf   :  { %p1189_p5 = scmp.lt.s32.totalorder %s1187_s30, %s1183_s29 }
  0x11   :  { %p1190_p6 = por %p1189_p5, %p1188_p4 }
  0x13   :  { %p1191_p7 = pnand %p1190_p6, %p1184_p3 }
  0x15   :  { %1194 = shalt.err (!%p1191_p7)
}
  0x16   :  { %54 = dma.hbm_to_vmem [thread:$0]  %s1925_s4, 16, %s52_s19, [#allocation7]  }
  0x17   :  { %s1195_s22 = scalar_lea.hbm %s1929_s8, 32 }
  0x18   :  { %p1196_p8 = scmp.ne.s32.totalorder %s1929_s8, %s1195_s22  ;;  %p1199_p9 = scmp.lt.u32.totalorder %s1195_s22, %s1929_s8 }
  0x1a   :  { %p1201_p10 = pnand %p1199_p9, %p1196_p8 }
  0x1c   :  { %1204 = shalt.err (!%p1201_p10)
}
  0x1d   :  { %s1205_s27 = scalar_lea.vmem %s78_s21, 32  ;;  %p1210_p12 = scmp.lt.s32.totalorder %s78_s21, %s78_s21 }
  0x1e   :  { %p1206_p11 = scmp.ne.s32.totalorder %s78_s21, %s1205_s27  ;;  %p1211_p13 = scmp.lt.s32.totalorder %s1205_s27, %s1205_s27 }
  0x20   :  { %p1212_p0 = por %p1211_p13, %p1210_p12 }
  0x22   :  { %p1213_p1 = pnand %p1212_p0, %p1206_p11 }
  0x24   :  { %1216 = shalt.err (!%p1213_p1)
}
  0x25   :  { %80 = dma.hbm_to_vmem [thread:$0]  %s1929_s8, 32, %s78_s21, [#allocation10]  }
  0x26   :  { %s1385_s28 = smov [#allocation12]   ;;  %s1386_s30 = smov [#allocation3]  }
  0x27   :  { %s99_s29 = sshll.u32 %s1385_s28, 4  ;;  %s38_s16 = sshll.u32 %s1386_s30, 4  ;;  %s100_s29 = int_to_ptr.vmem [resolvable:$true] %s99_s29  ;;  %s1505_s16 = int_to_ptr.vmem [resolvable:$true] %s38_s16 }
  0x28   :  { %s1217_s20 = scalar_lea.hbm %s1931_s10, 16 }
  0x29   :  { %p1218_p2 = scmp.ne.s32.totalorder %s1931_s10, %s1217_s20  ;;  %p1221_p3 = scmp.lt.u32.totalorder %s1217_s20, %s1931_s10 }
  0x2b   :  { %p1223_p4 = pnand %p1221_p3, %p1218_p2 }
  0x2d   :  { %1226 = shalt.err (!%p1223_p4)
}
  0x2e   :  { %s1227_s8 = scalar_lea.vmem %s100_s29, 16  ;;  %s1231_s21 = scalar_lea.vmem %s100_s29, 32 }
  0x2f   :  { %p1228_p5 = scmp.ne.s32.totalorder %s100_s29, %s1227_s8  ;;  %p1232_p6 = scmp.lt.s32.totalorder %s100_s29, %s100_s29 }
  0x30   :  { %p1233_p7 = scmp.lt.s32.totalorder %s1231_s21, %s1227_s8 }
  0x32   :  { %p1234_p8 = por %p1233_p7, %p1232_p6 }
  0x34   :  { %p1235_p9 = pnand %p1234_p8, %p1228_p5 }
  0x36   :  { %1238 = shalt.err (!%p1235_p9)
}
  0x37   :  { %102 = dma.hbm_to_vmem [thread:$0]  %s1931_s10, 16, %s100_s29, [#allocation13]  }
  0x38   :  { %s1239_s28 = scalar_lea.hbm %s1924_s3, 640 }
  0x39   :  { %p1240_p10 = scmp.ne.s32.totalorder %s1924_s3, %s1239_s28  ;;  %p1243_p11 = scmp.lt.u32.totalorder %s1239_s28, %s1924_s3 }
  0x3b   :  { %p1245_p12 = pnand %p1243_p11, %p1240_p10 }
  0x3d   :  { %1248 = shalt.err (!%p1245_p12)
}
  0x3e   :  { %s1249_s22 = scalar_lea.vmem %s1505_s16, 640  ;;  %p1254_p0 = scmp.lt.s32.totalorder %s1505_s16, %s1505_s16 }
  0x3f   :  { %p1250_p13 = scmp.ne.s32.totalorder %s1505_s16, %s1249_s22  ;;  %p1255_p1 = scmp.lt.s32.totalorder %s1249_s22, %s1249_s22 }
  0x41   :  { %p1256_p2 = por %p1255_p1, %p1254_p0 }
  0x43   :  { %p1257_p3 = pnand %p1256_p2, %p1250_p13 }
  0x45   :  { %1260 = shalt.err (!%p1257_p3)
}
  0x46   :  { %s1387_s10 = smov 128   ;;  %s1388_s29 = smov 8  }
  0x47   :  { %44 = dma.hbm_to_vmem [thread:$0]  %s1924_s3, 640, %s1505_s16, [#allocation4], %s1387_s10, %s1387_s10, %s1388_s29  }
  0x48   :  { %s1389_s25 = smov [#allocation8]   ;;  %s1261_s27 = scalar_lea.hbm %s1926_s5, 4608 }
  0x49   :  { %s60_s8 = sshll.u32 %s1389_s25, 4  ;;  %p1262_p4 = scmp.ne.s32.totalorder %s1926_s5, %s1261_s27  ;;  %s61_s8 = int_to_ptr.vmem [resolvable:$true] %s60_s8 }
  0x4a   :  { %p1265_p5 = scmp.lt.u32.totalorder %s1261_s27, %s1926_s5 }
  0x4c   :  { %p1267_p6 = pnand %p1265_p5, %p1262_p4 }
  0x4e   :  { %1270 = shalt.err (!%p1267_p6)
}
  0x4f   :  { %s1271_s17 = scalar_lea.vmem %s61_s8, 4608  ;;  %p1276_p8 = scmp.lt.s32.totalorder %s61_s8, %s61_s8 }
  0x50   :  { %p1272_p7 = scmp.ne.s32.totalorder %s61_s8, %s1271_s17  ;;  %p1277_p9 = scmp.lt.s32.totalorder %s1271_s17, %s1271_s17 }
  0x52   :  { %p1278_p10 = por %p1277_p9, %p1276_p8 }
  0x54   :  { %p1279_p11 = pnand %p1278_p10, %p1272_p7 }
  0x56   :  { %1282 = shalt.err (!%p1279_p11)
}
  0x57   :  { %s1390_s3 = smov 256   ;;  %s1391_s16 = smov 16  }
  0x58   :  { %66 = dma.hbm_to_vmem [thread:$0]  %s1926_s5, 4608, %s61_s8, [#allocation7], %s1390_s3, %s1390_s3, %s1391_s16  }
  0x59   :  { %s1392_s22 = smov [#allocation11]   ;;  %s1393_s24 = smov [#allocation14]  }
  0x5a   :  { %s86_s23 = sshll.u32 %s1392_s22, 4  ;;  %s111_s25 = sshll.u32 %s1393_s24, 4  ;;  %s87_s23 = int_to_ptr.vmem [resolvable:$true] %s86_s23  ;;  %s112_s25 = int_to_ptr.vmem [resolvable:$true] %s111_s25 }
  0x5b   :  { %s1283_s27 = scalar_lea.hbm %s1930_s9, 3072 }
  0x5c   :  { %p1284_p12 = scmp.ne.s32.totalorder %s1930_s9, %s1283_s27  ;;  %p1287_p13 = scmp.lt.u32.totalorder %s1283_s27, %s1930_s9 }
  0x5e   :  { %p1289_p0 = pnand %p1287_p13, %p1284_p12 }
  0x60   :  { %1292 = shalt.err (!%p1289_p0)
}
  0x61   :  { %s1293_s5 = scalar_lea.vmem %s87_s23, 3072  ;;  %p1298_p2 = scmp.lt.s32.totalorder %s87_s23, %s87_s23 }
  0x62   :  { %p1294_p1 = scmp.ne.s32.totalorder %s87_s23, %s1293_s5  ;;  %p1299_p3 = scmp.lt.s32.totalorder %s1293_s5, %s1293_s5 }
  0x64   :  { %p1300_p4 = por %p1299_p3, %p1298_p2 }
  0x66   :  { %p1301_p5 = pnand %p1300_p4, %p1294_p1 }
  0x68   :  { %1304 = shalt.err (!%p1301_p5)
}
  0x69   :  { %92 = dma.hbm_to_vmem [thread:$0]  %s1930_s9, 3072, %s87_s23, [#allocation10], %s1387_s10, %s1387_s10, %s1388_s29  }
  0x6a   :  { %s1305_s18 = scalar_lea.hbm %s1933_s12, 32 }
  0x6b   :  { %p1306_p6 = scmp.ne.s32.totalorder %s1933_s12, %s1305_s18  ;;  %p1309_p7 = scmp.lt.u32.totalorder %s1305_s18, %s1933_s12 }
  0x6d   :  { %p1311_p8 = pnand %p1309_p7, %p1306_p6 }
  0x6f   :  { %1314 = shalt.err (!%p1311_p8)
}
  0x70   :  { %s1315_s26 = scalar_lea.vmem %s112_s25, 32  ;;  %p1320_p10 = scmp.lt.s32.totalorder %s112_s25, %s112_s25 }
  0x71   :  { %p1316_p9 = scmp.ne.s32.totalorder %s112_s25, %s1315_s26  ;;  %p1321_p11 = scmp.lt.s32.totalorder %s1315_s26, %s1315_s26 }
  0x73   :  { %p1322_p12 = por %p1321_p11, %p1320_p10 }
  0x75   :  { %p1323_p13 = pnand %p1322_p12, %p1316_p9 }
  0x77   :  { %1326 = shalt.err (!%p1323_p13)
}
  0x78   :  { %114 = dma.hbm_to_vmem [thread:$0]  %s1933_s12, 32, %s112_s25, [#allocation13]  }
  0x79   :  { %s1394_s29 = smov [#allocation15]   ;;  %s1327_s19 = scalar_lea.hbm %s1934_s13, 32 }
  0x7a   :  { %s121_s23 = sshll.u32 %s1394_s29, 4  ;;  %p1328_p0 = scmp.ne.s32.totalorder %s1934_s13, %s1327_s19  ;;  %s122_s23 = int_to_ptr.vmem [resolvable:$true] %s121_s23 }
  0x7b   :  { %p1331_p1 = scmp.lt.u32.totalorder %s1327_s19, %s1934_s13 }
  0x7d   :  { %p1333_p2 = pnand %p1331_p1, %p1328_p0 }
  0x7f   :  { %1336 = shalt.err (!%p1333_p2)
}
  0x80   :  { %s1337_s17 = scalar_lea.vmem %s122_s23, 32  ;;  %p1342_p4 = scmp.lt.s32.totalorder %s122_s23, %s122_s23 }
  0x81   :  { %p1338_p3 = scmp.ne.s32.totalorder %s122_s23, %s1337_s17  ;;  %p1343_p5 = scmp.lt.s32.totalorder %s1337_s17, %s1337_s17 }
  0x83   :  { %p1344_p6 = por %p1343_p5, %p1342_p4 }
  0x85   :  { %p1345_p7 = pnand %p1344_p6, %p1338_p3 }
  0x87   :  { %1348 = shalt.err (!%p1345_p7)
}
  0x88   :  { %124 = dma.hbm_to_vmem [thread:$0]  %s1934_s13, 32, %s122_s23, [#allocation16]  }
  0x89   :  { %1371 = dma.done.wait [#allocation4], 640  }
  0x8a   :  { %1372 = vsyncadd [#allocation4], 4294966656 }
  0x8b   :  { %1373 = dma.done.wait [#allocation7], 4624  }
  0x8c   :  { %1374 = vsyncadd [#allocation7], 4294962672 }
  0x8d   :  { %1375 = dma.done.wait [#allocation10], 3104  }
  0x8e   :  { %1376 = vsyncadd [#allocation10], 4294964192 }
  0x8f   :  { %1377 = dma.done.wait [#allocation13], 48  }
  0x90   :  { %1378 = vsyncadd [#allocation13], 4294967248 }
  0x91   :  { %1379 = dma.done.wait [#allocation16], 32  }
  0x92   :  { %1380 = vsyncadd [#allocation16], 4294967264  ;;  %vm163_vm0 = vcmask 326656   ;;  %v151_v0 = vld [vmem:[#allocation3] sm:$0xff]  ;;  %v152_v1 = vld [vmem:[#allocation3 + $0x8] sm:$0xff]  ;;  %vm284_vm1 = vcmask 389120   ;;  %v307_v24 = vlaneseq }
  0x93   :  { %v153_v2 = vld [vmem:[#allocation3 + $0x10] sm:$0xff]  ;;  %v995_v3 = vpack.c.bf16 %v152_v1, %v151_v0  ;;  %v154_v4 = vld [vmem:[#allocation3 + $0x18] sm:$0xff]  ;;  %vm264_vm2 = vcmask 259072   ;;  %v283_v8 = vld [vmem:[%s1923_s2 + $0x8] sm:$0x1f]  ;;  %vm323_vm3 = vcmask 1041409  }
  0x94   :  { %v149_v5 = vld [vmem:[%s1921_s0] sm:$0xff]  ;;  %v999_v6 = vpack.c.bf16 %v154_v4, %v153_v2  ;;  %v292_v10 = vsel %vm284_vm1, %v283_v8, 0.0  ;;  %v263_v12 = vld [vmem:[%s1922_s1 + $0x8] sm:$0x3f]  ;;  %v1395_v22 = vmov 1983009808  }
  0x95   :  { %992 = vmatprep.mubr.msk.f32.mxu0 %vm163_vm0, %v149_v5  ;;  %v282_v7 = vld [vmem:[%s1923_s2] sm:$0x1f]  ;;  %996 = vmatprep.subr.bf16.mxu0 %v995_v3  ;;  %v293_v14 = vrot.slane %v292_v10, 4  ;;  %v272_v16 = vsel %vm264_vm2, %v263_v12, 0.0  ;;  %v305_v23 = vunpack.c.l.s4 %v1395_v22  ;;  %v150_v31 = vld [vmem:[%s1921_s0 + $0x8] sm:$0xff]  ;;  %v1609_v35 = vshrl.u32 %v307_v24, 7 }
  0x96   :  { %v285_v9 = vsel %vm284_vm1, %v282_v7, 0.0  ;;  %v262_v11 = vld [vmem:[%s1922_s1] sm:$0x3f]  ;;  %998 = vmatpush3.bf16.msra.mxu0 %v995_v3  ;;  %v273_v18 = vrot.slane %v272_v16, 4  ;;  %vm325_vm4 = vcmask 1043459   ;;  %vm327_vm5 = vcmask 1045509  }
  0x97   :  { %v286_v13 = vrot.slane %v285_v9, 4  ;;  %v265_v15 = vsel %vm264_vm2, %v262_v11, 0.0  ;;  %1000 = vmatprep.subr.bf16.mxu0 %v999_v6  ;;  %v155_v19 = vld [vmem:[#allocation3 + $0x20] sm:$0xff]  ;;  %v294_v21 = vadd.f32 %v293_v14, %v292_v10  ;;  %v306_v34 = vunpack.c.0.s8 %v305_v23  ;;  %s1396_s0 = smov 96   ;;  %s1397_s10 = smov 64   ;;  %v397_v1 = vld [vmem:[#allocation8 + $0x8] sm:$0xff] }
  0x98   :  { %v266_v17 = vrot.slane %v265_v15, 4  ;;  %v274_v26 = vadd.f32 %v273_v18, %v272_v16  ;;  %vm329_vm6 = vcmask 1047559   ;;  %v399_v2 = vld [vmem:[#allocation8 + $0x18] sm:$0xff]  ;;  %v396_v4 = vld [vmem:[#allocation8] sm:$0xff]  ;;  %v398_v5 = vld [vmem:[#allocation8 + $0x10] sm:$0xff]  ;;  %vm247_vm7 = vcmask 523264  }
  0x99   :  { %v287_v20 = vadd.f32 %v286_v13, %v285_v9  ;;  %v295_v28 = vrot.slane %v294_v21, 2  ;;  %v1613_v44 = vsub.s32 %v306_v34, %v1609_v35  ;;  %v1003_v3 = vpack.c.bf16 %v399_v2, %v397_v1  ;;  %v401_v7 = vld [vmem:[#allocation8 + $0x28] sm:$0xff]  ;;  %v403_v8 = vld [vmem:[#allocation8 + $0x38] sm:$0xff]  ;;  %v400_v10 = vld [vmem:[#allocation8 + $0x20] sm:$0xff] }
  0x9a   :  { %v267_v25 = vadd.f32 %v266_v17, %v265_v15  ;;  %1002 = vmatpush3.bf16.msra.mxu0 %v999_v6  ;;  %v275_v30 = vrot.slane %v274_v26, 2  ;;  %v1005_v6 = vpack.c.bf16 %v398_v5, %v396_v4  ;;  %v1007_v9 = vpack.c.bf16 %v403_v8, %v401_v7  ;;  %v402_v11 = vld [vmem:[#allocation8 + $0x30] sm:$0xff]  ;;  %v405_v13 = vld [vmem:[#allocation8 + $0x48] sm:$0xff]  ;;  %v407_v14 = vld [vmem:[#allocation8 + $0x58] sm:$0xff] }
  0x9b   :  { %v288_v27 = vrot.slane %v287_v20, 2  ;;  %990 = vmatprep.subr.mxu0 %v155_v19  ;;  %v296_v33 = vadd.f32 %v295_v28, %v294_v21  ;;  %1004 = vmatprep.subr.bf16.mxu1 %v1003_v3  ;;  %v1009_v12 = vpack.c.bf16 %v402_v11, %v400_v10  ;;  %v1011_v15 = vpack.c.bf16 %v407_v14, %v405_v13  ;;  %v404_v16 = vld [vmem:[#allocation8 + $0x40] sm:$0xff]  ;;  %v406_v17 = vld [vmem:[#allocation8 + $0x50] sm:$0xff] }
  0x9c   :  { %v268_v29 = vrot.slane %v267_v25, 2  ;;  %v276_v37 = vadd.f32 %v275_v30, %v274_v26  ;;  %1006 = vmatpush1.bf16.msra.mxu1 %v1005_v6  ;;  %v1013_v18 = vpack.c.bf16 %v406_v17, %v404_v16  ;;  %v408_v22 = vld [vmem:[#allocation8 + $0x60] sm:$0xff]  ;;  %v410_v23 = vld [vmem:[#allocation8 + $0x70] sm:$0xff]  ;;  %v415_v26 = vld [vmem:[#allocation8 + $0x98] sm:$0xff]  ;;  %vm391_vm8 = vcmask 1042176  }
  0x9d   :  { %v289_v32 = vadd.f32 %v288_v27, %v287_v20  ;;  %v297_v39 = vrot.slane %v296_v33, 1  ;;  %1008 = vmatprep.subr.bf16.mxu1 %v1007_v9  ;;  %v411_v20 = vld [vmem:[#allocation8 + $0x78] sm:$0xff]  ;;  %v1017_v24 = vpack.c.bf16 %v410_v23, %v408_v22  ;;  %v412_v28 = vld [vmem:[#allocation8 + $0x80] sm:$0xff]  ;;  %v539_v5 = vld [vmem:[%s1928_s7 + $0x58] sm:$0xff]  ;;  %vm392_vm9 = vcmask 125954  }
  0x9e   :  { %v269_v36 = vadd.f32 %v268_v29, %v267_v25  ;;  %991 = vmatpush3.msra.mxu0 %v155_v19  ;;  %v277_v41 = vrot.slane %v276_v37, 1  ;;  %v409_v19 = vld [vmem:[#allocation8 + $0x68] sm:$0xff]  ;;  %v414_v29 = vld [vmem:[#allocation8 + $0x90] sm:$0xff]  ;;  %v416_v34 = vld [vmem:[#allocation8 + $0xa0] sm:$0xff]  ;;  %vm332_vm10 = vcmask 517120   ;;  %vm388_vm11 = vcmask 785408  }
  0x9f   :  { %v290_v38 = vrot.slane %v289_v32, 1  ;;  %993 = vmatmul.mubr.msk.f32.vlgmr.msra.gmra.mrb[0].mxu0 %vm163_vm0, %v150_v31  ;;  %v298_v43 = vadd.f32 %v297_v39, %v296_v33  ;;  %v1015_v21 = vpack.c.bf16 %v411_v20, %v409_v19  ;;  %v413_v25 = vld [vmem:[#allocation8 + $0x88] sm:$0xff]  ;;  %v1021_v30 = vpack.c.bf16 %v414_v29, %v412_v28  ;;  %v423_v39 = vld [vmem:[#allocation8 + $0xd8] sm:$0xff]  ;;  %vm393_vm13 = vmor %vm392_vm9, %vm391_vm8 }
  0xa0   :  { %v270_v40 = vrot.slane %v269_v36, 1  ;;  %v278_v46 = vadd.f32 %v277_v41, %v276_v37  ;;  %1010 = vmatpush1.bf16.msra.mxu1 %v1009_v12  ;;  %v1019_v27 = vpack.c.bf16 %v415_v26, %v413_v25  ;;  %v417_v31 = vld [vmem:[#allocation8 + $0xa8] sm:$0xff]  ;;  %v420_v41 = vld [vmem:[#allocation8 + $0xc0] sm:$0xff]  ;;  %v532_v2 = vld [vmem:[%s1928_s7 + $0x20] sm:$0xff]  ;;  %vm360_vm12 = vcmask 779776  }
  0xa1   :  { %v291_v42 = vadd.f32 %v290_v38, %v289_v32  ;;  %v301_v48 = vmul.f32 0.2, %v298_v43  ;;  %1012 = vmatprep.subr.bf16.mxu1 %v1011_v15  ;;  %v419_v32 = vld [vmem:[#allocation8 + $0xb8] sm:$0xff]  ;;  %v421_v38 = vld [vmem:[#allocation8 + $0xc8] sm:$0xff]  ;;  %vm454_vm14 = vcmask 130048   ;;  %vm687_vm15 = vcmask 1041408  }
  0xa2   :  { %v271_v45 = vadd.f32 %v270_v40, %v269_v36  ;;  %v281_v50 = vmul.f32 0.16666667, %v278_v46  ;;  %v1023_v33 = vpack.c.bf16 %v419_v32, %v417_v31  ;;  %v418_v36 = vld [vmem:[#allocation8 + $0xb0] sm:$0xff]  ;;  %v1027_v40 = vpack.c.bf16 %v423_v39, %v421_v38  ;;  %v427_v46 = vld [vmem:[#allocation8 + $0xf8] sm:$0xff]  ;;  %v534_v3 = vld [vmem:[%s1928_s7 + $0x30] sm:$0xff] }
  0xa3   :  { %v300_v47 = vmul.f32 0.2, %v291_v42  ;;  %v377_v52 = vrot.slane %v301_v48, %v1613_v44  ;;  %v1025_v37 = vpack.c.bf16 %v418_v36, %v416_v34  ;;  %v422_v42 = vld [vmem:[#allocation8 + $0xd0] sm:$0xff]  ;;  %v537_v4 = vld [vmem:[%s1928_s7 + $0x48] sm:$0xff]  ;;  %v1045_v6 = vpack.c.bf16 %v534_v3, %v532_v2  ;;  %v538_v9 = vld [vmem:[%s1928_s7 + $0x50] sm:$0xff] }
  0xa4   :  { %v280_v49 = vmul.f32 0.16666667, %v271_v45  ;;  %v349_v54 = vrot.slane %v281_v50, %v1613_v44  ;;  %1014 = vmatpush1.bf16.msra.mxu1 %v1013_v18  ;;  %v1029_v43 = vpack.c.bf16 %v422_v42, %v420_v41  ;;  %v425_v45 = vld [vmem:[#allocation8 + $0xe8] sm:$0xff]  ;;  %v1047_v7 = vpack.c.bf16 %v539_v5, %v537_v4  ;;  %v536_v8 = vld [vmem:[%s1928_s7 + $0x40] sm:$0xff]  ;;  %v541_v10 = vld [vmem:[%s1928_s7 + $0x68] sm:$0xff] }
  0xa5   :  { %v370_v51 = vrot.slane %v300_v47, %v1613_v44  ;;  %v380_v55 = vrot.slane %v377_v52, 7  ;;  %1016 = vmatprep.subr.bf16.mxu1 %v1015_v21  ;;  %v424_v47 = vld [vmem:[#allocation8 + $0xe0] sm:$0xff]  ;;  %v1031_v48 = vpack.c.bf16 %v427_v46, %v425_v45  ;;  %v429_v50 = vld [vmem:[#allocation8 + $0x108] sm:$0xff]  ;;  %v1049_v12 = vpack.c.bf16 %v538_v9, %v536_v8  ;;  %v540_v14 = vld [vmem:[%s1928_s7 + $0x60] sm:$0xff] }
  0xa6   :  { %v342_v53 = vrot.slane %v280_v49, %v1613_v44  ;;  %v352_v56 = vrot.slane %v349_v54, 7  ;;  %v426_v49 = vld [vmem:[#allocation8 + $0xf0] sm:$0xff]  ;;  %v428_v54 = vld [vmem:[#allocation8 + $0x100] sm:$0xff]  ;;  %vm688_vm0 = vcmask 519170   ;;  %vm927_vm2 = vcmask 123904  }
  0xa7   :  { %v381_v57 = vsel %vm323_vm3, %v380_v55, %v370_v51  ;;  %v431_v51 = vld [vmem:[#allocation8 + $0x118] sm:$0xff]  ;;  %v1033_v52 = vpack.c.bf16 %v426_v49, %v424_v47  ;;  %v543_v11 = vld [vmem:[%s1928_s7 + $0x78] sm:$0xff]  ;;  %v542_v15 = vld [vmem:[%s1928_s7 + $0x70] sm:$0xff] }
  0xa8   :  { %v382_v58 = vsel %vm325_vm4, %v380_v55, %v381_v57  ;;  %v353_v59 = vsel %vm323_vm3, %v352_v56, %v342_v53  ;;  %1018 = vmatpush1.bf16.msra.mxu1 %v1017_v24  ;;  %v1035_v53 = vpack.c.bf16 %v431_v51, %v429_v50  ;;  %v529_v57 = vld [vmem:[%s1928_s7 + $0x8] sm:$0xff]  ;;  %v1051_v13 = vpack.c.bf16 %v543_v11, %v541_v10  ;;  %v547_v17 = vld [vmem:[%s1928_s7 + $0x98] sm:$0xff]  ;;  %v544_v20 = vld [vmem:[%s1928_s7 + $0x80] sm:$0xff] }
  0xa9   :  { %v383_v60 = vsel %vm327_vm5, %v380_v55, %v382_v58  ;;  %v354_v61 = vsel %vm325_vm4, %v352_v56, %v353_v59  ;;  %1020 = vmatprep.subr.bf16.mxu1 %v1019_v27  ;;  %v531_v58 = vld [vmem:[%s1928_s7 + $0x18] sm:$0xff]  ;;  %v528_v59 = vld [vmem:[%s1928_s7] sm:$0xff]  ;;  %v545_v16 = vld [vmem:[%s1928_s7 + $0x88] sm:$0xff]  ;;  %v1053_v18 = vpack.c.bf16 %v542_v15, %v540_v14 }
  0xaa   :  { %v384_v62 = vsel %vm329_vm6, %v380_v55, %v383_v60  ;;  %v355_v63 = vsel %vm327_vm5, %v352_v56, %v354_v61  ;;  %v430_v55 = vld [vmem:[#allocation8 + $0x110] sm:$0xff]  ;;  %v1039_v60 = vpack.c.bf16 %v531_v58, %v529_v57  ;;  %v530_v61 = vld [vmem:[%s1928_s7 + $0x10] sm:$0xff]  ;;  %v1055_v19 = vpack.c.bf16 %v547_v17, %v545_v16  ;;  %v549_v22 = vld [vmem:[%s1928_s7 + $0xa8] sm:$0xff] }
  0xab   :  { %385 = vrot.lane.b32.xlu0 %v384_v62, %s1396_s0  ;;  %v356_v0 = vsel %vm329_vm6, %v352_v56, %v355_v63  ;;  %v1037_v56 = vpack.c.bf16 %v430_v55, %v428_v54  ;;  %v533_v62 = vld [vmem:[%s1928_s7 + $0x28] sm:$0xff]  ;;  %v535_v63 = vld [vmem:[%s1928_s7 + $0x38] sm:$0xff]  ;;  %v546_v21 = vld [vmem:[%s1928_s7 + $0x90] sm:$0xff] }
  0xac   :  { %1022 = vmatpush1.bf16.msra.mxu1 %v1021_v30  ;;  %v1043_v1 = vpack.c.bf16 %v535_v63, %v533_v62  ;;  %1040 = vmatprep.subr.bf16.mxu0 %v1039_v60  ;;  %v551_v23 = vld [vmem:[%s1928_s7 + $0xb8] sm:$0xff]  ;;  %v1057_v24 = vpack.c.bf16 %v546_v21, %v544_v20  ;;  %v548_v26 = vld [vmem:[%s1928_s7 + $0xa0] sm:$0xff]  ;;  %v550_v27 = vld [vmem:[%s1928_s7 + $0xb0] sm:$0xff] }
  0xad   :  { %1024 = vmatprep.subr.bf16.mxu1 %v1023_v33  ;;  %v1059_v25 = vpack.c.bf16 %v551_v23, %v549_v22  ;;  %v553_v28 = vld [vmem:[%s1928_s7 + $0xc8] sm:$0xff]  ;;  %v555_v29 = vld [vmem:[%s1928_s7 + $0xd8] sm:$0xff]  ;;  %v1061_v30 = vpack.c.bf16 %v550_v27, %v548_v26  ;;  %v552_v32 = vld [vmem:[%s1928_s7 + $0xc0] sm:$0xff] }
  0xae   :  { %v1063_v31 = vpack.c.bf16 %v555_v29, %v553_v28  ;;  %v554_v33 = vld [vmem:[%s1928_s7 + $0xd0] sm:$0xff]  ;;  %v557_v34 = vld [vmem:[%s1928_s7 + $0xe8] sm:$0xff]  ;;  %v559_v36 = vld [vmem:[%s1928_s7 + $0xf8] sm:$0xff] }
  0xaf   :  { %357 = vrot.lane.b32.xlu0 %v356_v0, %s1397_s10  ;;  %v1041_v0 = vpack.c.bf16 %v530_v61, %v528_v59  ;;  %v1067_v38 = vpack.c.bf16 %v559_v36, %v557_v34  ;;  %v556_v39 = vld [vmem:[%s1928_s7 + $0xe0] sm:$0xff]  ;;  %v561_v41 = vld [vmem:[%s1928_s7 + $0x108] sm:$0xff]  ;;  %v563_v42 = vld [vmem:[%s1928_s7 + $0x118] sm:$0xff] }
  0xb0   :  { %1026 = vmatpush1.bf16.msra.mxu1 %v1025_v37  ;;  %v1065_v37 = vpack.c.bf16 %v554_v33, %v552_v32  ;;  %v1071_v45 = vpack.c.bf16 %v563_v42, %v561_v41  ;;  %v560_v46 = vld [vmem:[%s1928_s7 + $0x100] sm:$0xff]  ;;  %v562_v47 = vld [vmem:[%s1928_s7 + $0x110] sm:$0xff]  ;;  %v567_v49 = vld [vmem:[%s1928_s7 + $0x138] sm:$0xff]  ;;  %v1398_v41 = vmov 0.0|0.0  }
  0xb1   :  { %1028 = vmatprep.subr.bf16.mxu1 %v1027_v40  ;;  %1042 = vmatpush1.bf16.msra.mxu0 %v1041_v0  ;;  %v558_v40 = vld [vmem:[%s1928_s7 + $0xf0] sm:$0xff]  ;;  %v1073_v50 = vpack.c.bf16 %v562_v47, %v560_v46  ;;  %v569_v54 = vld [vmem:[%s1928_s7 + $0x148] sm:$0xff]  ;;  %v571_v55 = vld [vmem:[%s1928_s7 + $0x158] sm:$0xff] }
  0xb2   :  { %1044 = vmatprep.subr.bf16.mxu0 %v1043_v1  ;;  %v1079_v57 = vpack.c.bf16 %v571_v55, %v569_v54  ;;  %v568_v58 = vld [vmem:[%s1928_s7 + $0x140] sm:$0xff]  ;;  %v570_v59 = vld [vmem:[%s1928_s7 + $0x150] sm:$0xff]  ;;  %v964_v61 = vld [vmem:[#allocation6] ss:$0 sm:$0xff]  ;;  %v1800_v54 = vsub.s32 0, %v1609_v35 }
  0xb3   :  { %v1081_v60 = vpack.c.bf16 %v570_v59, %v568_v58  ;;  %v575_v32 = vld [vmem:[%s1928_s7 + $0x178] sm:$0xff]  ;;  %v572_v34 = vld [vmem:[%s1928_s7 + $0x160] sm:$0xff]  ;;  %v574_v36 = vld [vmem:[%s1928_s7 + $0x170] sm:$0xff] }
  0xb4   :  { %1030 = vmatpush1.bf16.msra.mxu1 %v1029_v43  ;;  %v1069_v43 = vpack.c.bf16 %v558_v40, %v556_v39  ;;  %v692_v39 = vld [vmem:[#allocation11 + $0x8] sm:$0xff]  ;;  %v693_v40 = vld [vmem:[#allocation11 + $0x10] sm:$0xff]  ;;  %v695_v46 = vld [vmem:[#allocation11 + $0x20] sm:$0xff] }
  0xb5   :  { %1032 = vmatprep.subr.bf16.mxu1 %v1031_v48  ;;  %1046 = vmatpush1.bf16.msra.mxu0 %v1045_v6  ;;  %v565_v48 = vld [vmem:[%s1928_s7 + $0x128] sm:$0xff]  ;;  %v696_v47 = vld [vmem:[#allocation11 + $0x28] sm:$0xff]  ;;  %vm689_vm1 = vmor %vm688_vm0, %vm687_vm15 }
  0xb6   :  { %1048 = vmatprep.subr.bf16.mxu0 %v1047_v7  ;;  %v1075_v51 = vpack.c.bf16 %v567_v49, %v565_v48  ;;  %v1094_v48 = vpack.c.bf16 %v696_v47, %v695_v46  ;;  %v697_v49 = vld [vmem:[#allocation11 + $0x30] sm:$0xff]  ;;  %v809_v46 = vld [vmem:[%s1932_s11 + $0x70] sm:$0xff]  ;;  %v812_v47 = vld [vmem:[%s1932_s11 + $0x88] sm:$0xff] }
  0xb8   :  { %1034 = vmatpush1.bf16.msra.mxu1 %v1033_v52  ;;  %v564_v52 = vld [vmem:[%s1928_s7 + $0x120] sm:$0xff] }
  0xb9   :  { %1036 = vmatprep.subr.bf16.mxu1 %v1035_v53  ;;  %1050 = vmatpush1.bf16.msra.mxu0 %v1049_v12  ;;  %v566_v53 = vld [vmem:[%s1928_s7 + $0x130] sm:$0xff] }
  0xba   :  { %1052 = vmatprep.subr.bf16.mxu0 %v1051_v13 }
  0xbc   :  { %1038 = vmatpush1.bf16.msra.mxu1 %v1037_v56  ;;  %v1077_v56 = vpack.c.bf16 %v566_v53, %v564_v52  ;;  %v1794_v52 = vsub.s32 1, %v1609_v35  ;;  %v432_v53 = vld [vmem:[%s1927_s6] sm:$0x3] }
  0xbd   :  { %1054 = vmatpush1.bf16.msra.mxu0 %v1053_v18  ;;  %1087 = vmatprep.subr.bf16.mxu1 %v1398_v41  ;;  %v701_v35 = vld [vmem:[#allocation11 + $0x50] sm:$0xff] }
  0xbe   :  { %1056 = vmatprep.subr.bf16.mxu0 %v1055_v19  ;;  %v441_v55 = vrot.slane %v432_v53, %v1794_v52 }
  0xc1   :  { %1058 = vmatpush1.bf16.msra.mxu0 %v1057_v24 }
  0xc2   :  { %1060 = vmatprep.subr.bf16.mxu0 %v1059_v25 }
  0xc5   :  { %1062 = vmatpush1.bf16.msra.mxu0 %v1061_v30 }
  0xc6   :  { %1064 = vmatprep.subr.bf16.mxu0 %v1063_v31  ;;  %v573_v31 = vld [vmem:[%s1928_s7 + $0x168] sm:$0xff] }
  0xc7   :  { %v1083_v33 = vpack.c.bf16 %v575_v32, %v573_v31  ;;  %v799_v31 = vld [vmem:[%s1932_s11 + $0x20] sm:$0xff]  ;;  %v801_v32 = vld [vmem:[%s1932_s11 + $0x30] sm:$0xff] }
  0xc9   :  { %1066 = vmatpush1.bf16.msra.mxu0 %v1065_v37  ;;  %v1085_v37 = vpack.c.bf16 %v574_v36, %v572_v34  ;;  %v806_v34 = vld [vmem:[%s1932_s11 + $0x58] sm:$0xff]  ;;  %v1129_v36 = vpack.c.bf16 %v801_v32, %v799_v31 }
  0xca   :  { %1068 = vmatprep.subr.bf16.mxu0 %v1067_v38  ;;  %v691_v38 = vld [vmem:[#allocation11] sm:$0xff] }
  0xcb   :  { %v1088_v42 = vpack.c.bf16 %v692_v39, %v691_v38  ;;  %v803_v38 = vld [vmem:[%s1932_s11 + $0x40] sm:$0xff]  ;;  %v805_v39 = vld [vmem:[%s1932_s11 + $0x50] sm:$0xff] }
  0xcd   :  { %1070 = vmatpush1.bf16.msra.mxu0 %v1069_v43  ;;  %v694_v43 = vld [vmem:[#allocation11 + $0x18] sm:$0xff] }
  0xce   :  { %1072 = vmatprep.subr.bf16.mxu0 %v1071_v45  ;;  %v1091_v45 = vpack.c.bf16 %v694_v43, %v693_v40  ;;  %v808_v40 = vld [vmem:[%s1932_s11 + $0x68] sm:$0xff] }
  0xd1   :  { %1074 = vmatpush1.bf16.msra.mxu0 %v1073_v50  ;;  %v698_v50 = vld [vmem:[#allocation11 + $0x38] sm:$0xff] }
  0xd2   :  { %1076 = vmatprep.subr.bf16.mxu0 %v1075_v51  ;;  %v1097_v51 = vpack.c.bf16 %v698_v50, %v697_v49 }
  0xd5   :  { %1078 = vmatpush1.bf16.msra.mxu0 %v1077_v56  ;;  %v437_v56 = vrot.slane %v432_v53, %v1800_v54  ;;  %v813_v53 = vld [vmem:[%s1932_s11 + $0x90] sm:$0xff] }
  0xd6   :  { %1080 = vmatprep.subr.bf16.mxu0 %v1079_v57 }
  0xd9   :  { %1082 = vmatpush1.bf16.msra.mxu0 %v1081_v60 }
  0xda   :  { %1084 = vmatprep.subr.bf16.mxu0 %v1083_v33  ;;  %v804_v33 = vld [vmem:[%s1932_s11 + $0x48] sm:$0xff] }
  0xdd   :  { %1086 = vmatpush1.bf16.msra.mxu0 %v1085_v37  ;;  %v1131_v37 = vpack.c.bf16 %v806_v34, %v804_v33 }
 0x11d   :  { %v386_v21 = vpop.permute.xlu0 %385 }
 0x11e   :  { %v387_v23 = vrot.slane %v386_v21, 6 }
 0x120   :  { %v389_v28 = vsel %vm388_vm11, %v387_v23, %v386_v21  ;;  %v798_v21 = vld [vmem:[%s1932_s11 + $0x18] sm:$0xff] }
 0x121   :  { %v358_v25 = vpop.permute.xlu0 %357 }
 0x172   :  { %v994_v62 = vpop.f32.mrb[0].mxu0 }
 0x173   :  { %v242_v63 = vadd.f32 %v994_v62, %v964_v61  ;;  %v236_v0 = vpop.f32.mrb[1].mxu0  ;;  %v700_v62 = vld [vmem:[#allocation11 + $0x48] sm:$0xff] }
 0x174   :  { %v237_v1 = vadd.f32 %v964_v61, %v236_v0  ;;  %v699_v61 = vld [vmem:[#allocation11 + $0x40] sm:$0xff]  ;;  %v702_v0 = vld [vmem:[#allocation11 + $0x58] sm:$0xff] }
 0x175   :  { %v246_v2 = vmax.f32 %v242_v63, 0.0  ;;  %v1100_v63 = vpack.c.bf16 %v700_v62, %v699_v61 }
 0x176   :  { %v245_v3 = vmax.f32 %v237_v1, 0.0  ;;  %v1103_v1 = vpack.c.bf16 %v702_v0, %v701_v35 }
 0x177   :  { %v255_v4 = vsel %vm247_vm7, %v246_v2, -inf  ;;  %v703_v2 = vld [vmem:[#allocation11 + $0x60] sm:$0xff] }
 0x178   :  { %v256_v5 = vrot.slane %v255_v4, 4  ;;  %v248_v6 = vsel %vm247_vm7, %v245_v3, -inf  ;;  %v704_v3 = vld [vmem:[#allocation11 + $0x68] sm:$0xff] }
 0x179   :  { %v249_v7 = vrot.slane %v248_v6, 4 }
 0x17a   :  { %v257_v8 = vmax.f32 %v255_v4, %v256_v5  ;;  %v1106_v4 = vpack.c.bf16 %v704_v3, %v703_v2  ;;  %v705_v5 = vld [vmem:[#allocation11 + $0x70] sm:$0xff] }
 0x17b   :  { %v250_v9 = vmax.f32 %v248_v6, %v249_v7  ;;  %v706_v6 = vld [vmem:[#allocation11 + $0x78] sm:$0xff] }
 0x17c   :  { %v258_v10 = vrot.slane %v257_v8, 2  ;;  %v1109_v7 = vpack.c.bf16 %v706_v6, %v705_v5 }
 0x17d   :  { %v251_v11 = vrot.slane %v250_v9, 2 }
 0x17e   :  { %v259_v12 = vmax.f32 %v257_v8, %v258_v10  ;;  %v707_v8 = vld [vmem:[#allocation11 + $0x80] sm:$0xff] }
 0x17f   :  { %v252_v13 = vmax.f32 %v250_v9, %v251_v11  ;;  %v708_v9 = vld [vmem:[#allocation11 + $0x88] sm:$0xff]  ;;  %v709_v11 = vld [vmem:[#allocation11 + $0x90] sm:$0xff] }
 0x180   :  { %v260_v14 = vrot.slane %v259_v12, 1  ;;  %v1112_v10 = vpack.c.bf16 %v708_v9, %v707_v8 }
 0x181   :  { %v253_v15 = vrot.slane %v252_v13, 1 }
 0x182   :  { %v261_v16 = vmax.f32 %v259_v12, %v260_v14  ;;  %v710_v12 = vld [vmem:[#allocation11 + $0x98] sm:$0xff] }
 0x183   :  { %v254_v17 = vmax.f32 %v252_v13, %v253_v15  ;;  %v711_v13 = vld [vmem:[#allocation11 + $0xa0] sm:$0xff]  ;;  %v1115_v14 = vpack.c.bf16 %v710_v12, %v709_v11  ;;  %v712_v15 = vld [vmem:[#allocation11 + $0xa8] sm:$0xff] }
 0x184   :  { %v317_v18 = vrot.slane %v261_v16, %v1613_v44  ;;  %v1118_v16 = vpack.c.bf16 %v712_v15, %v711_v13  ;;  %v815_v13 = vld [vmem:[%s1932_s11 + $0xa0] sm:$0xff]  ;;  %v1399_v15 = vmov 0.0  }
 0x185   :  { %v310_v19 = vrot.slane %v254_v17, %v1613_v44  ;;  %v713_v17 = vld [vmem:[#allocation11 + $0xb0] sm:$0xff] }
 0x186   :  { %v322_v20 = vrot.slane %v317_v18, 7  ;;  %v714_v18 = vld [vmem:[#allocation11 + $0xb8] sm:$0xff] }
 0x188   :  { %v324_v22 = vsel %vm323_vm3, %v322_v20, %v310_v19  ;;  %v1121_v19 = vpack.c.bf16 %v714_v18, %v713_v17 }
 0x189   :  { %v326_v24 = vsel %vm325_vm4, %v322_v20, %v324_v22  ;;  %v795_v22 = vld [vmem:[%s1932_s11] sm:$0xff] }
 0x18a   :  { %v328_v26 = vsel %vm327_vm5, %v322_v20, %v326_v24  ;;  %v797_v24 = vld [vmem:[%s1932_s11 + $0x10] sm:$0xff] }
 0x18b   :  { %v330_v27 = vsel %vm329_vm6, %v322_v20, %v328_v26  ;;  %v796_v20 = vld [vmem:[%s1932_s11 + $0x8] sm:$0xff]  ;;  %v802_v26 = vld [vmem:[%s1932_s11 + $0x38] sm:$0xff] }
 0x18c   :  { %333 = vst.msk [vmem:[#allocation2] sm:$0x3] %vm332_vm10, %v330_v27  ;;  %v1123_v23 = vpack.c.bf16 %v798_v21, %v796_v20  ;;  %v1125_v27 = vpack.c.bf16 %v797_v24, %v795_v22  ;;  %v819_v21 = vld [vmem:[#allocation14] sm:$0x3] }
 0x18d   :  { %361 = vst.msk [vmem:[#allocation2] sm:$0x3] %vm360_vm12, %v358_v25  ;;  %v800_v25 = vld [vmem:[%s1932_s11 + $0x28] sm:$0xff]  ;;  %v824_v22 = vrot.slane %v819_v21, %v1800_v54 }
 0x18e   :  { %394 = vst.msk [vmem:[#allocation2] sm:$0xf] %vm393_vm13, %v389_v28  ;;  %v1127_v28 = vpack.c.bf16 %v802_v26, %v800_v25  ;;  %1124 = vmatprep.subr.bf16.mxu0 %v1123_v23  ;;  %v828_v23 = vrot.slane %v819_v21, %v1794_v52 }
 0x195   :  { %v1768_v29 = vld.sshfl [vmem:[#allocation2] sm:$0x33 pattern:$0x76325410] }
 0x196   :  { %v1772_v30 = vcombine.high %v1768_v29, %v1768_v29 }
 0x198   :  { %968 = vmatprep.mubr.msk.f32.mxu1 %vm454_vm14, %v1772_v30 }
 0x199   :  { %522 = vmatmul.mubr.f32.vlgmr.msra.gmra.mrb[0].mxu1 %v1768_v29 }
 0x19a   :  { %1089 = vmatpush1.bf16.msra.mxu1 %v1088_v42  ;;  %v1133_v42 = vpack.c.bf16 %v805_v39, %v803_v38 }
 0x19b   :  { %1090 = vmatprep.subr.bf16.mxu1 %v1398_v41 }
 0x19e   :  { %1092 = vmatpush1.bf16.msra.mxu1 %v1091_v45  ;;  %v807_v45 = vld [vmem:[%s1932_s11 + $0x60] sm:$0xff] }
 0x19f   :  { %1093 = vmatprep.subr.bf16.mxu1 %v1398_v41  ;;  %v1137_v49 = vpack.c.bf16 %v809_v46, %v807_v45 }
 0x1a2   :  { %1095 = vmatpush1.bf16.msra.mxu1 %v1094_v48  ;;  %v814_v48 = vld [vmem:[%s1932_s11 + $0x98] sm:$0xff] }
 0x1a3   :  { %1096 = vmatprep.subr.bf16.mxu1 %v1398_v41  ;;  %v1139_v50 = vpack.c.bf16 %v814_v48, %v812_v47 }
 0x1a6   :  { %1098 = vmatpush1.bf16.msra.mxu1 %v1097_v51  ;;  %v811_v51 = vld [vmem:[%s1932_s11 + $0x80] sm:$0xff] }
 0x1a7   :  { %1099 = vmatprep.subr.bf16.mxu1 %v1398_v41 }
 0x1aa   :  { %1101 = vmatpush1.bf16.msra.mxu1 %v1100_v63 }
 0x1ab   :  { %1102 = vmatprep.subr.bf16.mxu1 %v1398_v41 }
 0x1ae   :  { %1104 = vmatpush1.bf16.msra.mxu1 %v1103_v1 }
 0x1af   :  { %1105 = vmatprep.subr.bf16.mxu1 %v1398_v41 }
 0x1b2   :  { %1107 = vmatpush1.bf16.msra.mxu1 %v1106_v4 }
 0x1b3   :  { %1108 = vmatprep.subr.bf16.mxu1 %v1398_v41 }
 0x1b6   :  { %1110 = vmatpush1.bf16.msra.mxu1 %v1109_v7 }
 0x1b7   :  { %1111 = vmatprep.subr.bf16.mxu1 %v1398_v41 }
 0x1ba   :  { %1113 = vmatpush1.bf16.msra.mxu1 %v1112_v10 }
 0x1bb   :  { %1114 = vmatprep.subr.bf16.mxu1 %v1398_v41 }
 0x1be   :  { %1116 = vmatpush1.bf16.msra.mxu1 %v1115_v14 }
 0x1bf   :  { %1117 = vmatprep.subr.bf16.mxu1 %v1398_v41 }
 0x1c2   :  { %1119 = vmatpush1.bf16.msra.mxu1 %v1118_v16  ;;  %v972_v16 = vld [vmem:[#allocation12] ss:$0 sm:$0xff] }
 0x1c3   :  { %1120 = vmatprep.subr.bf16.mxu1 %v1398_v41  ;;  %v810_v41 = vld [vmem:[%s1932_s11 + $0x78] sm:$0xff] }
 0x1c4   :  { %v1135_v43 = vpack.c.bf16 %v810_v41, %v808_v40 }
 0x1c6   :  { %1122 = vmatpush1.bf16.msra.mxu1 %v1121_v19 }
 0x26c   :  { %v523_v57 = vpop.f32.mrb[0].mxu1 }
 0x26d   :  { %v525_v58 = vpop.f32.mrb[1].mxu1  ;;  %v1806_v60 = vadd.f32 %v523_v57, %v437_v56  ;;  %v576_v56 = vld [vmem:[#allocation9] sm:$0x3] }
 0x26e   :  { %v1804_v59 = vadd.f32 %v525_v58, %v441_v55  ;;  %v1141_v55 = vpack.c.bf16 %v813_v53, %v811_v51  ;;  %v581_v57 = vrot.slane %v576_v56, %v1800_v54  ;;  %v585_v58 = vrot.slane %v576_v56, %v1794_v52 }
 0x270   :  { %969 = vmatprep.mubr.msk.f32.mxu0 %vm247_vm7, %v1804_v59 }
 0x271   :  { %656 = vmatmul.mubr.f32.vlgmr.msra.gmra.mrb[2].mxu0 %v1806_v60 }
 0x272   :  { %1126 = vmatpush1.bf16.msra.mxu0 %v1125_v27  ;;  %898 = vmatprep.mubr.f32.mxu0 %v1399_v15 }
 0x273   :  { %1128 = vmatprep.subr.bf16.mxu0 %v1127_v28  ;;  %v912_v28 = vld [vmem:[#allocation15] sm:$0x3] }
 0x274   :  { %v917_v34 = vrot.slane %v912_v28, %v1800_v54 }
 0x276   :  { %1130 = vmatpush1.bf16.msra.mxu0 %v1129_v36 }
 0x277   :  { %1132 = vmatprep.subr.bf16.mxu0 %v1131_v37  ;;  %v921_v37 = vrot.slane %v912_v28, %v1794_v52 }
 0x27a   :  { %1134 = vmatpush1.bf16.msra.mxu0 %v1133_v42 }
 0x27b   :  { %1136 = vmatprep.subr.bf16.mxu0 %v1135_v43 }
 0x27e   :  { %1138 = vmatpush1.bf16.msra.mxu0 %v1137_v49 }
 0x27f   :  { %1140 = vmatprep.subr.bf16.mxu0 %v1139_v50 }
 0x282   :  { %1142 = vmatpush1.bf16.msra.mxu0 %v1141_v55 }
 0x344   :  { %v657_v61 = vpop.f32.mrb[2].mxu0 }
 0x345   :  { %v658_v62 = vadd.f32 %v657_v61, %v581_v57  ;;  %v659_v63 = vpop.f32.mrb[3].mxu0 }
 0x346   :  { %v660_v35 = vadd.f32 %v659_v63, %v585_v58 }
 0x347   :  { %v970_v0 = vmul.f32 -1.442695, %v658_v62 }
 0x348   :  { %v971_v1 = vmul.f32 -1.442695, %v660_v35 }
 0x349   :  { %1165 = vpow2.f32 %v970_v0 }
 0x34a   :  { %1167 = vpow2.f32 %v971_v1 }
 0x353   :  { %v1166_v2 = vpop.eup %1165 }
 0x354   :  { %v1168_v3 = vpop.eup %1167  ;;  %v668_v4 = vadd.f32 1.0, %v1166_v2 }
 0x355   :  { %v669_v5 = vadd.f32 1.0, %v1168_v3 }
 0x356   :  { %1169 = vrcp.f32 %v668_v4 }
 0x357   :  { %1171 = vrcp.f32 %v669_v5 }
 0x360   :  { %v1170_v6 = vpop.eup %1169 }
 0x361   :  { %v1172_v7 = vpop.eup %1171  ;;  %v674_v8 = vmul.f32 %v1170_v6, %v1806_v60  ;;  %v816_v60 = vld [vmem:[%s1932_s11 + $0xa8] sm:$0xff] }
 0x362   :  { %v675_v9 = vmul.f32 %v1172_v7, %v1804_v59  ;;  %v818_v59 = vld [vmem:[%s1932_s11 + $0xb8] sm:$0xff] }
 0x363   :  { %v1143_v12 = vpack.c.bf16 %v818_v59, %v816_v60 }
 0x364   :  { %973 = vmatprep.mubr.msk.f32.mxu1 %vm247_vm7, %v675_v9  ;;  %v678_v10 = vcombine.low %v674_v8, %v675_v9 }
 0x365   :  { %789 = vmatmul.mubr.f32.vlgmr.msra.gmra.mrb[2].mxu1 %v674_v8  ;;  %1144 = vmatprep.subr.bf16.mxu0 %v1143_v12 }
 0x366   :  { %v685_v11 = vrot.slane %v678_v10, %v1613_v44  ;;  %v817_v44 = vld [vmem:[%s1932_s11 + $0xb0] sm:$0xff]  ;;  %s1400_s11 = smov [#allocation17]  }
 0x367   :  { %v1145_v14 = vpack.c.bf16 %v817_v44, %v815_v13 }
 0x368   :  { %690 = vst.msk [vmem:[%s1935_s14] sm:$0xf] %vm689_vm1, %v685_v11  ;;  %s949_s14 = sshll.u32 %s1400_s11, 4  ;;  %s950_s14 = int_to_ptr.vmem [resolvable:$true] %s949_s14 }
 0x369   :  { %1146 = vmatpush1.bf16.msra.mxu0 %v1145_v14  ;;  %s1349_s13 = scalar_lea.vmem %s950_s14, 16  ;;  %s1353_s18 = scalar_lea.vmem %s950_s14, 32 }
 0x36a   :  { %p1350_p8 = scmp.ne.s32.totalorder %s950_s14, %s1349_s13  ;;  %p1354_p9 = scmp.lt.s32.totalorder %s950_s14, %s950_s14 }
 0x36b   :  { %p1355_p10 = scmp.lt.s32.totalorder %s1353_s18, %s1349_s13 }
 0x36d   :  { %p1356_p11 = por %p1355_p10, %p1354_p9 }
 0x36f   :  { %p1357_p12 = pnand %p1356_p11, %p1350_p8 }
 0x438   :  { %v790_v17 = vpop.f32.mrb[2].mxu1 }
 0x439   :  { %v791_v18 = vadd.f32 %v972_v16, %v790_v17  ;;  %v792_v19 = vpop.f32.mrb[3].mxu1 }
 0x43b   :  { %v794_v20 = vmax.f32 %v791_v18, 0.0 }
 0x43d   :  { %974 = vmatmul.mubr.msk.f32.vlgmr.msra.gmra.mrb[4].mxu0 %vm388_vm11, %v794_v20 }
 0x510   :  { %v900_v24 = vpop.f32.mrb[4].mxu0 }
 0x511   :  { %v901_v25 = vadd.f32 %v900_v24, %v824_v22  ;;  %v902_v26 = vpop.f32.mrb[5].mxu0 }
 0x512   :  { %v903_v27 = vadd.f32 %v902_v26, %v828_v23 }
 0x513   :  { %v905_v31 = vmax.f32 %v901_v25, 0.0 }
 0x514   :  { %v906_v32 = vmax.f32 %v903_v27, 0.0 }
 0x515   :  { %v908_v33 = vsub.f32 %v905_v31, %v1768_v29 }
 0x516   :  { %v909_v36 = vsub.f32 %v906_v32, %v1772_v30 }
 0x517   :  { %v910_v38 = vmul.f32 %v908_v33, %v908_v33 }
 0x518   :  { %v911_v39 = vmul.f32 %v909_v36, %v909_v36 }
 0x519   :  { %v924_v40 = vmul.f32 %v917_v34, %v910_v38 }
 0x51a   :  { %v925_v41 = vmul.f32 %v921_v37, %v911_v39 }
 0x51b   :  { %v926_v42 = vsel %vm687_vm15, %v924_v40, 0.0 }
 0x51c   :  { %v928_v43 = vsel %vm927_vm2, %v925_v41, 0.0 }
 0x51d   :  { %v929_v45 = vadd.f32 %v928_v43, %v926_v42 }
 0x51f   :  { %930 = vadd.xlane.f32.xlu1 %v929_v45 }
 0x5ac   :  { %v931_v46 = vpop.xlane.xlu1 %930 }
 0x5ad   :  { %v932_v47 = vsel %vm687_vm15, %v931_v46, 0.0 }
 0x5ae   :  { %v933_v29 = vrot.slane %v932_v47, 4 }
 0x5b0   :  { %v934_v48 = vadd.f32 %v933_v29, %v932_v47 }
 0x5b2   :  { %v935_v54 = vrot.slane %v934_v48, 2 }
 0x5b4   :  { %v936_v49 = vadd.f32 %v935_v54, %v934_v48 }
 0x5b6   :  { %v937_v30 = vrot.slane %v936_v49, 1 }
 0x5b8   :  { %v938_v52 = vadd.f32 %v937_v30, %v936_v49 }
 0x5ba   :  { %v939_v50 = vmul.f32 0.5, %v938_v52 }
 0x5bc   :  { %940 = vst [vmem:[#allocation17] sm:$0x1] %v939_v50 }
 0x5bd   :  { %1360 = shalt.err (!%p1357_p12)
}
 0x5be   :  { %s1361_s7 = scalar_lea.hbm %s1936_s15, 16 }
 0x5bf   :  { %p1362_p13 = scmp.ne.s32.totalorder %s1936_s15, %s1361_s7  ;;  %p1365_p0 = scmp.lt.u32.totalorder %s1361_s7, %s1936_s15 }
 0x5c1   :  { %p1367_p1 = pnand %p1365_p0, %p1362_p13 }
 0x5c3   :  { %1370 = shalt.err (!%p1367_p1)
}
 0x5c4   :  { %952 = dma.vmem_to_hbm [thread:$0]  %s950_s14, 16, %s1936_s15, [#allocation5]  }
 0x5c5   :  { %1381 = dma.done.wait [#allocation5], 16  }
 0x5c6   :  { %1382 = vsyncadd [#allocation5], 4294967280 }
 0x5c7   :  { %958 = vsyncpa [#allocation4], 1 }
 0x5c8   :  { %959 = vsyncpa [#allocation7], 1 }
 0x5c9   :  { %960 = vsyncpa [#allocation10], 1 }
 0x5ca   :  { %961 = vsyncpa [#allocation13], 1 }
 0x5cb   :  { %962 = vsyncpa [#allocation16], 1 }
 0x5cc   :  { %963 = vsyncpa [#allocation5], 1 }

</bundles_post_ra>
